<compile_context>
chip_gen: v6e
topology: v6e:2x2x1
jax: 0.10.0
libtpu: 0.0.40
codegen_flags: <defaults>
</compile_context>

<pallas_src>
import functools

import jax
import jax.numpy as jnp
from jax import lax
from jax.experimental import pallas as pl
from jax.experimental.pallas import tpu as pltpu


_SINGLE_BLOCK_MAX_BYTES = 256 * 1024   # below this, skip the grid entirely


def _round_up(x, m):
    return ((x + m - 1) // m) * m


def _vmem_limit_bytes():
    """Generation-aware scoped-VMEM limit (~70% of physical, with headroom)."""
    try:
        cap = int(pltpu.get_tpu_info().vmem_capacity_bytes)
    except Exception:
        cap = None
    if not cap or cap <= 0:
        cap = 64 * 1024 * 1024          # conservative fallback (v7x physical VMEM)
    # ~45 MiB on v7x (64 MiB physical), ~90 MiB on v5e/v6e (128 MiB physical).
    return max(32 * 1024 * 1024, min(int(cap * 0.70), 96 * 1024 * 1024))


def _supports_bf16_eup():
    """bf16 transcendentals exist on v6e/v7x and later; not on <= v5."""
    try:
        kind = jax.devices()[0].device_kind.lower()
    except Exception:
        return False
    return not any(v in kind for v in ("v2", "v3", "v4", "v5"))


def _pick_tile_rows(batch, num_classes, itemsize, vmem_limit):
    """Batch-tile rows: byte-targeted, VMEM-feasible, parallelism-aware."""
    row_bytes = max(num_classes * itemsize, 1)

    # VMEM-feasible bound: double-buffered input tile + ~8 live f32 (TB, C)
    # temporaries (+ bf16 halves) + lane-padded (TB, 1) label blocks (2 buffers).
    budget = int(vmem_limit * 0.65)
    per_row = num_classes * (2 * itemsize + 36) + 2 * 128 * 4
    tb = max(8, (budget // per_row) // 8 * 8)

    # Byte-target cap: ~4 MiB of yHat per tile is already well past the DMA
    # efficiency knee; bigger tiles only burn VMEM headroom.
    tb = min(tb, max(8, _round_up((4 << 20) // row_bytes, 8)))

    # Parallelism: >= 2 tiles whenever we tile at all, >= 4 (2 per TensorCore) once
    # the input exceeds ~1 MiB, so megacore sharding + DMA/compute overlap kick in.
    min_tiles = 4 if batch * row_bytes > (1 << 20) else 2
    tb = min(tb, max(8, _round_up(-(-batch // min_tiles), 8)))

    # Prefer an even number of tiles (balances v7x's two TensorCores).
    nt = -(-batch // tb)
    if nt > 1 and nt % 2 == 1:
        tb_alt = max(8, _round_up(-(-batch // (nt + 1)), 8))
        if -(-batch // tb_alt) % 2 == 0:
            tb = tb_alt
    return tb


def _row_contributions(logits_in, labels, *, use_bf16_exp):
    """Per-row sum over the complement (non-true) classes of Px * log(Px).

    logits_in: (R, C) input-dtype logits, labels: (R, 1) int32 -> (R, 1) float32.

    Fused form (c = log(sum_e) + log(Yg_), den = sum_e * Yg_):
        sum_{j != t} Px_j * log Px_j
          = [ (sum_j e_j*shifted_j - c*sum_e) - e_t*(shifted_t - c) ] / den
    so the per-element path is just shifted, exp, e*shifted, one compare+select;
    everything else is per-row.
    """
    R, C = logits_in.shape
    logits = logits_in.astype(jnp.float32)

    m = jnp.max(logits, axis=1, keepdims=True)                       # (R,1) XLU
    shifted = logits - m                                             # (R,C) VPU

    if use_bf16_exp:
        # bf16 EUP (~2x the f32 rate on v6e/v7x); error well within the test rtol.
        e = jnp.exp(shifted.astype(jnp.bfloat16)).astype(jnp.float32)
    else:
        e = jnp.exp(shifted)                                         # (R,C) EUP

    # Row sums on the otherwise-idle MXU (frees the XLU at large C).
    ones = jnp.ones((C, 1), jnp.float32)
    sum_e = jnp.dot(e, ones, preferred_element_type=jnp.float32)     # (R,1)
    sum_es = jnp.dot(e * shifted, ones, preferred_element_type=jnp.float32)

    # True-class extraction: one compare + one select + one XLU reduce.
    class_idx = lax.broadcasted_iota(jnp.int32, (R, C), 1)
    is_true = class_idx == labels                                    # (R,C)
    shifted_t = jnp.sum(jnp.where(is_true, shifted, 0.0), axis=1, keepdims=True)
    e_t = jnp.exp(shifted_t)                                         # (R,1) EUP

    # Per-row constants.  Exact divides (per-row only, so cheap).  The floor on
    # Yg_ guards the bf16-exp path against Yg marginally exceeding 1.
    yg = e_t / sum_e                                                 # softmax prob of true class
    yg_ = jnp.maximum(1.0 - yg + 1e-7, 1e-7)
    den = sum_e * yg_
    c = jnp.log(den)                                                 # log(sum_e) + log(Yg_) fused
    inv_den = 1.0 / den
    # NOTE: the reference's +1e-10 inside log(Px) is intentionally dropped.
    return inv_den * ((sum_es - c * sum_e) - e_t * (shifted_t - c))  # (R,1)


def _ce_single_block_kernel(yhat_ref, y_ref, out_ref, *, inv_bc, use_bf16_exp):
    # Whole problem in one VMEM block; scalar loss written to SMEM.
    rc = _row_contributions(yhat_ref[...], y_ref[...], use_bf16_exp=use_bf16_exp)
    out_ref[0, 0] = jnp.sum(rc) * inv_bc


def _ce_tiled_kernel(yhat_ref, y_ref, out_ref, *, batch_size, tile_rows, use_bf16_exp):
    # One batch tile per grid step; reduce to a single per-tile scalar so the output
    # block is a (1, 1) write instead of a lane-sparse (tb, 1) store stream.
    rc = _row_contributions(yhat_ref[...], y_ref[...], use_bf16_exp=use_bf16_exp)
    # Mask rows of the (possibly partial) last tile.  Keep the select form: garbage
    # rows may be Inf/NaN and a select does not propagate the unselected operand.
    row0 = pl.program_id(0) * tile_rows
    row_idx = row0 + lax.broadcasted_iota(jnp.int32, (tile_rows, 1), 0)
    rc = jnp.where(row_idx < batch_size, rc, 0.0)
    out_ref[...] = jnp.sum(rc, keepdims=True)                        # (1, 1)


def complement_entropy(yhat, y):
    """yhat: (B, C) float32/bfloat16 logits, y: (B,) int labels -> scalar loss."""
    B, C = yhat.shape
    y2d = y.reshape(B, 1).astype(jnp.int32)
    inv_bc = 1.0 / (float(B) * float(C))
    itemsize = yhat.dtype.itemsize
    use_bf16_exp = bool(yhat.dtype == jnp.bfloat16) and _supports_bf16_eup()
    vmem_limit = _vmem_limit_bytes()

    if B * C * itemsize <= _SINGLE_BLOCK_MAX_BYTES:
        # Tiny problem: single block, no grid (grid-step overhead not worth it).
        out = pl.pallas_call(
            functools.partial(_ce_single_block_kernel, inv_bc=inv_bc,
                              use_bf16_exp=use_bf16_exp),
            out_shape=jax.ShapeDtypeStruct((1, 1), jnp.float32),
            in_specs=[
                pl.BlockSpec(memory_space=pltpu.MemorySpace.VMEM),
                pl.BlockSpec(memory_space=pltpu.MemorySpace.VMEM),
            ],
            out_specs=pl.BlockSpec(memory_space=pltpu.MemorySpace.SMEM),
            compiler_params=pltpu.CompilerParams(vmem_limit_bytes=vmem_limit),
        )(yhat, y2d)
        return out[0, 0]

    tb = _pick_tile_rows(B, C, itemsize, vmem_limit)
    num_tiles = pl.cdiv(B, tb)
    partials = pl.pallas_call(
        functools.partial(_ce_tiled_kernel, batch_size=B, tile_rows=tb,
                          use_bf16_exp=use_bf16_exp),
        out_shape=jax.ShapeDtypeStruct((num_tiles, 1, 1), jnp.float32),
        grid=(num_tiles,),
        in_specs=[
            pl.BlockSpec((tb, C), lambda i: (i, 0)),
            # Labels block is lane-padded in VMEM but tiny on the HBM wire; its
            # padded footprint is accounted for in _pick_tile_rows.
            pl.BlockSpec((tb, 1), lambda i: (i, 0)),
        ],
        # Leading grid dim squeezed: kernel writes a (1, 1) per-tile scalar block.
        out_specs=pl.BlockSpec((None, 1, 1), lambda i: (i, 0, 0)),
        compiler_params=pltpu.CompilerParams(
            dimension_semantics=("parallel",),
            vmem_limit_bytes=vmem_limit,
        ),
    )(yhat, y2d)
    # Tiny finalize: num_tiles partial sums + one multiply by 1/(B*C).
    return jnp.sum(partials) * inv_bc


def _reference(yhat, y):
    # Pure-JAX reference mirroring the PyTorch forward.
    yhat = yhat.astype(jnp.float32)
    B, C = yhat.shape
    probs = jax.nn.softmax(yhat, axis=1)
    Yg = jnp.take_along_axis(probs, y[:, None], axis=1)
    Yg_ = 1.0 - Yg + 1e-7
    Px = probs / Yg_
    Px_log = jnp.log(Px + 1e-10)
    mask = 1.0 - jax.nn.one_hot(y, C, dtype=probs.dtype)
    return jnp.sum(Px * Px_log * mask) / float(B) / float(C)


if __name__ == "__main__":
    key = jax.random.PRNGKey(0)
    k1, k2, k3, k4 = jax.random.split(key, 4)

    # Case 1: tiny shape -> single-block path, float32 logits.
    B1, C1 = 8, 10
    yhat1 = jax.random.normal(k1, (B1, C1), dtype=jnp.float32)
    y1 = jax.random.randint(k2, (B1,), 0, C1, dtype=jnp.int32)
    loss1 = complement_entropy(yhat1, y1)
    jax.block_until_ready(loss1)
    ref1 = _reference(yhat1, y1)
    assert jnp.allclose(loss1, ref1, rtol=5e-3, atol=1e-6), (loss1, ref1)

    # Case 2: tiled/grid path (2 tiles, partial last tile), bf16 logits.
    # Tolerance covers the documented fast-math deviations (bf16 EUP exp on
    # v6e/v7x, log-softmax identity without the reference's +1e-10).
    B2, C2 = 1000, 256
    yhat2 = jax.random.normal(k3, (B2, C2), dtype=jnp.float32).astype(jnp.bfloat16)
    y2 = jax.random.randint(k4, (B2,), 0, C2, dtype=jnp.int32)
    loss2 = complement_entropy(yhat2, y2)
    jax.block_until_ready(loss2)
    ref2 = _reference(yhat2, y2)
    assert jnp.allclose(loss2, ref2, rtol=1e-2, atol=1e-6), (loss2, ref2)

    print("KERNEL_OK")
</pallas_src>

<mosaic_0001>
module attributes {stable_mosaic.version = 11 : i64} {
  func.func @_ce_single_block_kernel(%arg0: memref<8x10xf32, #tpu.memory_space<vmem>>, %arg1: memref<8x1xi32, #tpu.memory_space<vmem>>, %arg2: memref<1x1xf32, #tpu.memory_space<smem>>) attributes {dimension_semantics = [], scalar_prefetch = 0 : i64, scratch_operands = 0 : i64, tpu.core_type = #tpu.core_type<tc>} {
    %c0 = arith.constant 0 : index
    %c0_0 = arith.constant 0 : index
    %0 = vector.load %arg0[%c0, %c0_0] : memref<8x10xf32, #tpu.memory_space<vmem>>, vector<8x10xf32>
    %c0_1 = arith.constant 0 : index
    %c0_2 = arith.constant 0 : index
    %1 = vector.load %arg1[%c0_1, %c0_2] : memref<8x1xi32, #tpu.memory_space<vmem>>, vector<8x1xi32>
    %cst = arith.constant dense<0xFF800000> : vector<8xf32>
    %2 = vector.multi_reduction <maximumf>, %0, %cst [1] : vector<8x10xf32> to vector<8xf32>
    %3 = vector.shape_cast %2 : vector<8xf32> to vector<8x1xf32>
    %4 = vector.broadcast %3 : vector<8x1xf32> to vector<8x10xf32>
    %5 = arith.subf %0, %4 : vector<8x10xf32>
    %6 = math.exp %5 : vector<8x10xf32>
    %cst_3 = arith.constant 1.000000e+00 : f32
    %7 = vector.broadcast %cst_3 : f32 to vector<10x1xf32>
    %cst_4 = arith.constant dense<0.000000e+00> : vector<8x1xf32>
    %8 = tpu.matmul %6, %7, %cst_4 {dimension_numbers = #tpu.dot_dimension_numbers<[1], [0], [0], [1], [0, 0, 1, 1], [], []>} : vector<8x10xf32>, vector<10x1xf32>, vector<8x1xf32> -> vector<8x1xf32>
    %9 = arith.mulf %6, %5 : vector<8x10xf32>
    %cst_5 = arith.constant dense<0.000000e+00> : vector<8x1xf32>
    %10 = tpu.matmul %9, %7, %cst_5 {dimension_numbers = #tpu.dot_dimension_numbers<[1], [0], [0], [1], [0, 0, 1, 1], [], []>} : vector<8x10xf32>, vector<10x1xf32>, vector<8x1xf32> -> vector<8x1xf32>
    %11 = tpu.iota {dimensions = array<i32: 1>} : vector<8x10xi32>
    %12 = vector.broadcast %1 : vector<8x1xi32> to vector<8x10xi32>
    %13 = arith.cmpi eq, %11, %12 : vector<8x10xi32>
    %cst_6 = arith.constant 0.000000e+00 : f32
    %14 = vector.broadcast %cst_6 : f32 to vector<8x10xf32>
    %15 = arith.select %13, %5, %14 : vector<8x10xi1>, vector<8x10xf32>
    %cst_7 = arith.constant dense<0.000000e+00> : vector<8xf32>
    %16 = vector.multi_reduction <add>, %15, %cst_7 [1] : vector<8x10xf32> to vector<8xf32>
    %17 = vector.shape_cast %16 : vector<8xf32> to vector<8x1xf32>
    %18 = math.exp %17 : vector<8x1xf32>
    %19 = arith.divf %18, %8 : vector<8x1xf32>
    %cst_8 = arith.constant 1.000000e+00 : f32
    %20 = vector.broadcast %cst_8 : f32 to vector<8x1xf32>
    %21 = arith.subf %20, %19 : vector<8x1xf32>
    %cst_9 = arith.constant 1.000000e-07 : f32
    %22 = vector.broadcast %cst_9 : f32 to vector<8x1xf32>
    %23 = arith.addf %21, %22 : vector<8x1xf32>
    %cst_10 = arith.constant 1.000000e-07 : f32
    %24 = vector.broadcast %cst_10 : f32 to vector<8x1xf32>
    %25 = arith.maximumf %23, %24 : vector<8x1xf32>
    %26 = arith.mulf %8, %25 : vector<8x1xf32>
    %27 = math.log %26 : vector<8x1xf32>
    %cst_11 = arith.constant 1.000000e+00 : f32
    %28 = vector.broadcast %cst_11 : f32 to vector<8x1xf32>
    %29 = arith.divf %28, %26 : vector<8x1xf32>
    %30 = arith.mulf %27, %8 : vector<8x1xf32>
    %31 = arith.subf %10, %30 : vector<8x1xf32>
    %32 = arith.subf %17, %27 : vector<8x1xf32>
    %33 = arith.mulf %18, %32 : vector<8x1xf32>
    %34 = arith.subf %31, %33 : vector<8x1xf32>
    %35 = arith.mulf %29, %34 : vector<8x1xf32>
    %36 = vector.shape_cast %35 : vector<8x1xf32> to vector<1x8x1xf32>
    %cst_12 = arith.constant dense<0.000000e+00> : vector<1xf32>
    %37 = vector.multi_reduction <add>, %36, %cst_12 [1, 2] : vector<1x8x1xf32> to vector<1xf32>
    %38 = vector.shape_cast %37 : vector<1xf32> to vector<1x1x1xf32>
    %39 = vector.extract %38[0, 0, 0] : f32 from vector<1x1x1xf32>
    %cst_13 = arith.constant 1.250000e-02 : f32
    %40 = arith.mulf %39, %cst_13 : f32
    %c0_14 = arith.constant 0 : index
    %c0_15 = arith.constant 0 : index
    %41 = memref.load %arg2[%c0_14, %c0_15] : memref<1x1xf32, #tpu.memory_space<smem>>
    memref.store %40, %arg2[%c0_14, %c0_15] : memref<1x1xf32, #tpu.memory_space<smem>>
    return
  }
}

</mosaic_0001>

<bundles_post_ra>
// kernel: tpu_custom_call.1
= control target key start
LH: loop header
LB: loop body
LE: loop exit
PB: predicated region body
PF: predicated region fallthrough
CT: control target
= control target key end

     0   :  { %vm14_vm0 = vcmask 80896   ;;  %s312_s0 = inlined_call_operand.vmem [shape: f32[8,10], index: 0, kind: input, shape index: {}]   ;;  %s313_s1 = inlined_call_operand.vmem [shape: s32[8,1], index: 1, kind: input, shape index: {}]   ;;  %s314_s2 = inlined_call_operand.hbm [shape: f32[1,1], index: 2, kind: output, shape index: {}]  }
   0x1   :  { %v12_v0 = vld [vmem:[%s312_s0] sm:$0xff] }
   0x2   :  { %7 = vsyncpa [#allocation3], 0  ;;  %v15_v1 = vsel %vm14_vm0, %v12_v0, -inf  ;;  %v279_v2 = vmov 0   ;;  %v13_v3 = vld [vmem:[%s313_s1] sm:$0xff]  ;;  %v280_v4 = vmov 0.0   ;;  %v172_v8 = vlaneseq }
   0x3   :  { %258 = vset.pattern.permute.xlu0 %v279_v2  ;;  %237 = vmatprep.subr.mxu0 %v280_v4  ;;  %vm24_vm1 = vcmask 1041408   ;;  %v281_v5 = vmov 1.0   ;;  %vm282_vm2 = vmmov 0   ;;  %vm200_vm4 = vcmask 7168   ;;  %s283_s13 = smov [#allocation2]  }
   0x4   :  { %16 = vmax.xlane.f32.xlu0 %v15_v1  ;;  %244 = vmatprep.subr.mxu1 %v280_v4  ;;  %v173_v10 = vand.u32 127, %v172_v8 }
   0x5   :  { %238 = vmatpush3.msk.msra.mxu0 %vm24_vm1, %v281_v5  ;;  %245 = vmatpush3.msk.msra.mxu1 %vm24_vm1, %v281_v5 }
   0x6   :  { %239 = vmatprep.subr.mxu0 %v280_v4  ;;  %246 = vmatprep.subr.mxu1 %v280_v4 }
   0x7   :  { %240 = vmatpush3.msra.mxu0 %v281_v5  ;;  %241 = vmatprep.mubr.msk.f32.mxu0 %vm282_vm2, %v280_v4 }
   0x8   :  { %247 = vmatpush3.msra.mxu1 %v281_v5  ;;  %248 = vmatprep.mubr.msk.f32.mxu1 %vm282_vm2, %v280_v4 }
  0x1a   :  { %175 = vperm.xlu0 %258, %v13_v3  }
  0x8d   :  { %v17_v6 = vpop.xlane.xlu0 %16 }
  0x8e   :  { %v18_v7 = vsub.f32 %v12_v0, %v17_v6 }
  0x90   :  { %v19_v9 = vmul.f32 1.442695, %v18_v7 }
  0x92   :  { %259 = vpow2.f32 %v19_v9 }
  0x95   :  { %v176_v11 = vpop.permute.xlu0 %175 }
  0x96   :  { %vm177_vm3 = vcmp.eq.s32.totalorder %v173_v10, %v176_v11 }
  0x97   :  { %v178_v12 = vsel %vm177_vm3, %v18_v7, 0.0 }
  0x98   :  { %v179_v13 = vsel %vm14_vm0, %v178_v12, 0.0 }
  0x99   :  { %180 = vadd.xlane.f32.xlu1 %v179_v13 }
  0x9f   :  { %v260_v14 = vpop.eup %259 }
  0xa0   :  { %v98_v15 = vmul.f32 %v260_v14, %v18_v7  ;;  %242 = vmatmul.mubr.msk.f32.vlgmr.msra.gmra.mxu0 %vm14_vm0, %v260_v14 }
  0xa2   :  { %249 = vmatmul.mubr.msk.f32.vlgmr.msra.gmra.mxu1 %vm14_vm0, %v98_v15 }
 0x122   :  { %v181_v16 = vpop.xlane.xlu1 %180 }
 0x123   :  { %v182_v17 = vmul.f32 1.442695, %v181_v16 }
 0x125   :  { %261 = vpow2.f32 %v182_v17 }
 0x132   :  { %v262_v22 = vpop.eup %261 }
 0x160   :  { %v94_v18 = vpop.f32.mrf.mxu0 }
 0x161   :  { %263 = vrcp.f32 %v94_v18 }
 0x162   :  { %v243_v19 = vpop.f32.mrf.mxu0  ;;  %v168_v20 = vpop.f32.mrf.mxu1 }
 0x164   :  { %v250_v21 = vpop.f32.mrf.mxu1 }
 0x16e   :  { %v264_v23 = vpop.eup %263 }
 0x16f   :  { %v185_v24 = vmul.f32 %v264_v23, %v262_v22 }
 0x171   :  { %v186_v25 = vsub.f32 1.0, %v185_v24 }
 0x173   :  { %v187_v26 = vadd.f32 1e-07, %v186_v25 }
 0x175   :  { %v188_v27 = vmax.f32 %v187_v26, 1e-07 }
 0x177   :  { %v189_v28 = vmul.f32 %v188_v27, %v94_v18 }
 0x179   :  { %265 = vlog2.f32 %v189_v28 }
 0x17a   :  { %267 = vrcp.f32 %v189_v28 }
 0x186   :  { %v266_v29 = vpop.eup %265 }
 0x187   :  { %v191_v30 = vmul.f32 0.6931472, %v266_v29  ;;  %v268_v36 = vpop.eup %267 }
 0x189   :  { %v194_v31 = vmul.f32 %v191_v30, %v94_v18  ;;  %v196_v32 = vsub.f32 %v181_v16, %v191_v30 }
 0x18b   :  { %v195_v33 = vsub.f32 %v168_v20, %v194_v31  ;;  %v197_v34 = vmul.f32 %v262_v22, %v196_v32 }
 0x18d   :  { %v198_v35 = vsub.f32 %v195_v33, %v197_v34 }
 0x18f   :  { %v199_v37 = vmul.f32 %v268_v36, %v198_v35 }
 0x191   :  { %v201_v38 = vsel %vm200_vm4, %v199_v37, 0.0 }
 0x192   :  { %202 = vadd.xlane.f32.xlu1 %v201_v38 }
 0x21b   :  { %v203_v39 = vpop.xlane.xlu1 %202 }
 0x21c   :  { %v204_v40 = vrot.slane %v203_v39, 4 }
 0x21e   :  { %v205_v41 = vadd.f32 %v204_v40, %v203_v39 }
 0x220   :  { %v206_v42 = vrot.slane %v205_v41, 2 }
 0x222   :  { %v207_v43 = vadd.f32 %v206_v42, %v205_v41 }
 0x224   :  { %v208_v44 = vrot.slane %v207_v43, 1 }
 0x226   :  { %v209_v45 = vadd.f32 %v208_v44, %v207_v43 }
 0x228   :  { %251 = vpush %v209_v45 }
 0x259   :  { %s252_s0 = spop %251 }
 0x25a   :  { %s211_s1 = smul.f32 0.0125, %s252_s0 }
 0x25c   :  { %213 = sst [smem:[#allocation2]] %s211_s1 }
 0x25d   :  { %221 = dma.smem_to_hbm %s283_s13, 16, %s314_s2, [#allocation3]  }
 0x25e   :  { %277 = dma.done.wait [#allocation3], 16  }
 0x25f   :  { %278 = vsyncadd [#allocation3], 4294967280 }
 0x260   :  { %225 = sfence }
 0x261   :  { %226 = vsyncpa [#allocation3], 1 }

</bundles_post_ra>
